<compile_context>
chip_gen: v7x
topology: tpu7x:2x2x1
jax: 0.10.0
libtpu: 0.0.40
codegen_flags: <defaults>
</compile_context>

<pallas_src>
import functools

import jax
import jax.numpy as jnp
from jax.experimental import pallas as pl
from jax.experimental.pallas import tpu as pltpu


_TK_MAX = 2048   # above this, tile K with its own reduction grid axis
_TK = 1024       # K tile when tiling (multiple of 128)


def _round_up(n, m):
    return ((n + m - 1) // m) * m


def _cdiv(a, b):
    return (a + b - 1) // b


def _vmem_caps():
    """Derive a VMEM working-set budget and scoped limit from the hardware."""
    cap = 64 * 1024 * 1024  # conservative default (v7x per-TC VMEM)
    try:
        info = pltpu.get_tpu_info()
        cap = int(getattr(info, "vmem_capacity_bytes", cap))
    except Exception:
        pass
    limit = min(int(cap * 0.72), 100 * 1024 * 1024)  # headroom for compiler scratch
    budget = int(limit * 0.85)
    return budget, limit


# ----------------------------- Pallas kernels ------------------------------ #
def _conv_bn_relu_kernel_single(p_ref, w_ref, shift_ref, o_ref):
    # Single K step: no accumulator needed, fuse shift + ReLU directly.
    y = jnp.dot(p_ref[...], w_ref[...], preferred_element_type=jnp.float32)
    o_ref[...] = jnp.maximum(y + shift_ref[...], 0.0)


def _conv_bn_relu_kernel_multi(p_ref, w_ref, shift_ref, o_ref):
    # K reduction axis is last (program_id(2)); the f32 output block is
    # resident across it and doubles as the accumulator.
    k = pl.program_id(2)
    prod = jnp.dot(p_ref[...], w_ref[...], preferred_element_type=jnp.float32)

    @pl.when(k == 0)
    def _():
        o_ref[...] = prod

    @pl.when(k > 0)
    def _():
        o_ref[...] += prod

    @pl.when(k == pl.num_programs(2) - 1)
    def _():
        o_ref[...] = jnp.maximum(o_ref[...] + shift_ref[...], 0.0)


def _fused_matmul_shift_relu(patches, w_flat, shift, tk, *, budget, limit,
                             tm_init=1024):
    """patches (M, K_pad) bf16, w_flat (K_pad, C_pad) bf16, shift (1, C_pad) f32."""
    M, K_pad = patches.shape
    _, C_pad = w_flat.shape
    nk = K_pad // tk

    # Output-channel tile: cover the whole padded channel dim when feasible so
    # the patches panel streams from HBM exactly once.
    if C_pad <= 1024:
        tn = C_pad
    elif C_pad % 512 == 0:
        tn = 512
    else:
        tn = 256  # C_pad is a multiple of 256 by construction when > 256

    tm = min(tm_init, _round_up(M, 128))

    def tile_bytes(tm_, tn_):
        return (2 * tm_ * tk * 2      # bf16 patches, double-buffered
                + 2 * tk * tn_ * 2    # bf16 weight, double-buffered
                + 2 * tn_ * 4         # f32 shift
                + 2 * tm_ * tn_ * 4)  # f32 output (also the accumulator)

    while tn > 256 and tile_bytes(128, tn) > budget:
        tn //= 2  # C_pad is a multiple of 256 here, so tn keeps dividing it
    while tm > 128 and tile_bytes(tm, tn) > budget:
        tm //= 2
    # Feed both TensorCores on v7x: aim for >= 2 parallel blocks.
    if _cdiv(M, tm) * (C_pad // tn) < 2 and tm > 128:
        tm = max(128, _round_up(_cdiv(M, 2), 128))

    nm = _cdiv(M, tm)       # ragged last M tile handled by Pallas masking
    nj = C_pad // tn

    if nk == 1:
        grid = (nm, nj)
        in_specs = [
            pl.BlockSpec((tm, tk), lambda i, j: (i, 0)),
            pl.BlockSpec((tk, tn), lambda i, j: (0, j)),
            pl.BlockSpec((1, tn), lambda i, j: (0, j)),
        ]
        out_spec = pl.BlockSpec((tm, tn), lambda i, j: (i, j))
        kernel = _conv_bn_relu_kernel_single
        semantics = ("parallel", "parallel")
    else:
        grid = (nm, nj, nk)
        in_specs = [
            pl.BlockSpec((tm, tk), lambda i, j, k: (i, k)),
            pl.BlockSpec((tk, tn), lambda i, j, k: (k, j)),
            pl.BlockSpec((1, tn), lambda i, j, k: (0, j)),
        ]
        out_spec = pl.BlockSpec((tm, tn), lambda i, j, k: (i, j))
        kernel = _conv_bn_relu_kernel_multi
        semantics = ("parallel", "parallel", "arbitrary")

    return pl.pallas_call(
        kernel,
        out_shape=jax.ShapeDtypeStruct((M, C_pad), jnp.float32),
        grid_spec=pltpu.PrefetchScalarGridSpec(
            num_scalar_prefetch=0,
            grid=grid,
            in_specs=in_specs,
            out_specs=out_spec,
        ),
        compiler_params=pltpu.CompilerParams(
            dimension_semantics=semantics,
            vmem_limit_bytes=limit),
    )(patches, w_flat, shift)


# ------------------------------ JAX glue ----------------------------------- #
def _im2col_nhwc_bf16(x_nchw, kh, kw, stride, padding, dilation, k_pad_to):
    """(N, C, H, W) f32 -> bf16 patches (N*OH*OW, k_pad_to), K ordered (KH, KW, C).

    Casts to bf16 first and folds the K zero-padding into the same
    concatenation pass (single patches materialization).
    """
    N, C, H, W = x_nchw.shape
    x = jnp.transpose(x_nchw.astype(jnp.bfloat16), (0, 2, 3, 1))  # NHWC bf16
    if padding:
        x = jnp.pad(x, ((0, 0), (padding, padding), (padding, padding), (0, 0)))
    Hp = H + 2 * padding
    Wp = W + 2 * padding
    OH = (Hp - dilation * (kh - 1) - 1) // stride + 1
    OW = (Wp - dilation * (kw - 1) - 1) // stride + 1

    cols = []
    for i in range(kh):
        for j in range(kw):
            h0 = i * dilation
            w0 = j * dilation
            cols.append(x[:, h0:h0 + (OH - 1) * stride + 1:stride,
                             w0:w0 + (OW - 1) * stride + 1:stride, :])
    K = kh * kw * C
    if k_pad_to > K:
        cols.append(jnp.zeros((N, OH, OW, k_pad_to - K), jnp.bfloat16))
    patches = cols[0] if len(cols) == 1 else jnp.concatenate(cols, axis=-1)
    return patches.reshape(N * OH * OW, k_pad_to), OH, OW


class BasicConv2dPallas:
    """Deterministic, in-script parameterized Conv2d(bias=False)+BN(eval)+ReLU."""

    def __init__(self, in_planes, out_planes, kernel_size,
                 stride=1, padding=0, dilation=1, key=None, eps=1e-5):
        self.in_planes = in_planes
        self.out_planes = out_planes
        self.kh = self.kw = kernel_size
        self.stride = stride
        self.padding = padding
        self.dilation = dilation
        self.eps = eps
        self._vmem_budget, self._vmem_limit = _vmem_caps()

        key = jax.random.PRNGKey(42) if key is None else key
        kw_, kg, kb, km, kv = jax.random.split(key, 5)
        # Conv weight, PyTorch layout (OC, IC, KH, KW)
        fan_in = in_planes * kernel_size * kernel_size
        bound = 1.0 / (fan_in ** 0.5)
        self.weight = jax.random.uniform(
            kw_, (out_planes, in_planes, kernel_size, kernel_size),
            minval=-bound, maxval=bound, dtype=jnp.float32)
        # BN params + running stats (inference mode)
        self.gamma = 1.0 + 0.1 * jax.random.normal(kg, (out_planes,), jnp.float32)
        self.beta = 0.1 * jax.random.normal(kb, (out_planes,), jnp.float32)
        self.running_mean = 0.05 * jax.random.normal(km, (out_planes,), jnp.float32)
        self.running_var = 1.0 + 0.1 * jnp.abs(
            jax.random.normal(kv, (out_planes,), jnp.float32))

    @functools.partial(jax.jit, static_argnums=0)
    def __call__(self, x):
        N, C, H, W = x.shape
        assert C == self.in_planes
        OC = self.out_planes

        # K tiling decision (reduction axis only for very large K).
        K = self.kh * self.kw * C
        if K > _TK_MAX:
            tk = _TK
            K_pad = _round_up(K, tk)
        else:
            K_pad = _round_up(K, 128)   # lane-dense K even in the 1-tile case
            tk = K_pad

        patches, OH, OW = _im2col_nhwc_bf16(
            x, self.kh, self.kw, self.stride, self.padding, self.dilation, K_pad)

        # Fold BN into a per-channel scale (into the weight) and shift.
        inv_std = jax.lax.rsqrt(self.running_var + self.eps)
        scale = self.gamma * inv_std
        shift = self.beta - self.running_mean * scale

        # Lane-dense output channels: 128 granularity for small layers
        # (v5e-native), 256 granularity above that (v6e/v7x 256-wide MXU).
        C_pad = _round_up(OC, 128)
        if C_pad > 256:
            C_pad = _round_up(OC, 256)

        # (OC, IC, KH, KW) * scale -> (K_pad, C_pad) with K ordered (KH, KW, IC)
        w_scaled = self.weight * scale[:, None, None, None]
        w_flat = jnp.transpose(w_scaled, (2, 3, 1, 0)).reshape(K, OC)
        w_flat = jnp.pad(
            w_flat, ((0, K_pad - K), (0, C_pad - OC))).astype(jnp.bfloat16)
        shift_p = jnp.pad(shift, (0, C_pad - OC)).reshape(1, C_pad)

        out = _fused_matmul_shift_relu(
            patches, w_flat, shift_p, tk,
            budget=self._vmem_budget, limit=self._vmem_limit)

        # (M, C_pad) -> (N, OC, OH, OW)
        out = out[:, :OC].reshape(N, OH, OW, OC)
        return jnp.transpose(out, (0, 3, 1, 2))


# ------------------------------ reference ---------------------------------- #
def _reference(module, x):
    """Same math, with the same bf16 operand rounding, via XLA conv."""
    inv_std = jax.lax.rsqrt(module.running_var + module.eps)
    scale = module.gamma * inv_std
    shift = module.beta - module.running_mean * scale
    w_scaled = module.weight * scale[:, None, None, None]
    xb = x.astype(jnp.bfloat16).astype(jnp.float32)
    wb = w_scaled.astype(jnp.bfloat16).astype(jnp.float32)
    y = jax.lax.conv_general_dilated(
        xb, wb,
        window_strides=(module.stride, module.stride),
        padding=[(module.padding, module.padding)] * 2,
        rhs_dilation=(module.dilation, module.dilation),
        dimension_numbers=("NCHW", "OIHW", "NCHW"))
    return jnp.maximum(y + shift[None, :, None, None], 0.0)


if __name__ == "__main__":
    # small shapes: batch=2, in_planes=4, out_planes=8, spatial=16, k=3, pad=1
    key = jax.random.PRNGKey(0)
    x = jax.random.normal(key, (2, 4, 16, 16), dtype=jnp.float32)

    mod = BasicConv2dPallas(in_planes=4, out_planes=8, kernel_size=3,
                            stride=1, padding=1, dilation=1,
                            key=jax.random.PRNGKey(1))

    out = mod(x)
    jax.block_until_ready(out)

    ref = _reference(mod, x)
    assert out.shape == (2, 8, 16, 16), out.shape
    max_err = float(jnp.max(jnp.abs(out - ref)))
    assert jnp.allclose(out, ref, atol=2e-3, rtol=2e-3), max_err

    print("KERNEL_OK")
</pallas_src>

<mosaic_0001>
module attributes {stable_mosaic.version = 11 : i64} {
  func.func @_conv_bn_relu_kernel_single(%arg0: i32, %arg1: i32, %arg2: memref<256x128xbf16, #tpu.memory_space<vmem>>, %arg3: memref<128x128xbf16, #tpu.memory_space<vmem>>, %arg4: memref<1x128xf32, #tpu.memory_space<vmem>>, %arg5: memref<256x128xf32, #tpu.memory_space<vmem>>) attributes {dimension_semantics = [#tpu.dimension_semantics<parallel>, #tpu.dimension_semantics<parallel>], iteration_bounds = array<i64: 2, 1>, scalar_prefetch = 0 : i64, scratch_operands = 0 : i64, tpu.core_type = #tpu.core_type<tc>, window_params = [{transform_indices = @transform_0, window_bounds = array<i64: 256, 128>}, {transform_indices = @transform_1, window_bounds = array<i64: 128, 128>}, {transform_indices = @transform_2, window_bounds = array<i64: 1, 128>}, {transform_indices = @transform_3, window_bounds = array<i64: 256, 128>}]} {
    %c0 = arith.constant 0 : index
    %c0_0 = arith.constant 0 : index
    %0 = vector.load %arg2[%c0, %c0_0] : memref<256x128xbf16, #tpu.memory_space<vmem>>, vector<256x128xbf16>
    %c0_1 = arith.constant 0 : index
    %c0_2 = arith.constant 0 : index
    %1 = vector.load %arg3[%c0_1, %c0_2] : memref<128x128xbf16, #tpu.memory_space<vmem>>, vector<128x128xbf16>
    %cst = arith.constant dense<0.000000e+00> : vector<256x128xf32>
    %2 = tpu.matmul %0, %1, %cst {dimension_numbers = #tpu.dot_dimension_numbers<[1], [0], [0], [1], [0, 0, 1, 1], [], []>} : vector<256x128xbf16>, vector<128x128xbf16>, vector<256x128xf32> -> vector<256x128xf32>
    %c0_3 = arith.constant 0 : index
    %c0_4 = arith.constant 0 : index
    %3 = vector.load %arg4[%c0_3, %c0_4] : memref<1x128xf32, #tpu.memory_space<vmem>>, vector<1x128xf32>
    %4 = vector.broadcast %3 : vector<1x128xf32> to vector<256x128xf32>
    %5 = arith.addf %2, %4 : vector<256x128xf32>
    %cst_5 = arith.constant 0.000000e+00 : f32
    %6 = vector.broadcast %cst_5 : f32 to vector<256x128xf32>
    %7 = arith.maximumf %5, %6 : vector<256x128xf32>
    %c0_6 = arith.constant 0 : index
    %c0_7 = arith.constant 0 : index
    %8 = vector.load %arg5[%c0_6, %c0_7] : memref<256x128xf32, #tpu.memory_space<vmem>>, vector<256x128xf32>
    tpu.vector_store %arg5[%c0_6, %c0_7], %7 {strides = array<i32>} : memref<256x128xf32, #tpu.memory_space<vmem>>, vector<256x128xf32>,
    return
  }
  func.func @transform_0(%arg0: i32, %arg1: i32) -> (i32, i32) {
    %c0_i32 = arith.constant 0 : i32
    %c0_i32_0 = arith.constant 0 : i32
    return %arg0, %c0_i32 : i32, i32
  }
  func.func @transform_1(%arg0: i32, %arg1: i32) -> (i32, i32) {
    %c0_i32 = arith.constant 0 : i32
    %c0_i32_0 = arith.constant 0 : i32
    return %c0_i32, %arg1 : i32, i32
  }
  func.func @transform_2(%arg0: i32, %arg1: i32) -> (i32, i32) {
    %c0_i32 = arith.constant 0 : i32
    %c0_i32_0 = arith.constant 0 : i32
    return %c0_i32, %arg1 : i32, i32
  }
  func.func @transform_3(%arg0: i32, %arg1: i32) -> (i32, i32) {
    %c0_i32 = arith.constant 0 : i32
    return %arg0, %arg1 : i32, i32
  }
}

</mosaic_0001>

<bundles_post_ra>
// kernel: a_call__.1
= control target key start
LH: loop header
LB: loop body
LE: loop exit
PB: predicated region body
PF: predicated region fallthrough
CT: control target
= control target key end

     0   :  { %s970_s12 = smov 0   ;;  %s972_s13 = smov 0   ;;  %s1120_s0 = inlined_call_operand.vmem [shape: bf16[512,128], index: 0, kind: input, shape index: {}]   ;;  %s1121_s1 = inlined_call_operand.vmem [shape: bf16[128,128], index: 1, kind: input, shape index: {}]   ;;  %s1122_s2 = inlined_call_operand.vmem [shape: f32[1,128], index: 2, kind: input, shape index: {}]   ;;  %s1123_s3 = inlined_call_operand.vmem [shape: f32[512,128], index: 3, kind: output, shape index: {}]  }
   0x1   :  { %s974_s14 = smov 0  }
   0x2 LB: > { %s25_s15 = sadd.s32 1, %s944_s13  ;;  %p758_p0 = scmp.ge.s32.totalorder %s948_s14, 1  ;;  %s948_s14 = sphi %s974_s14, %s13_s14   ;;  %s944_s13 = sphi %s972_s13, %s1125_s13   ;;  %s940_s12 = sphi %s970_s12, %s1124_s12  }
   0x3   : > { %p27_p1 = scmp.ge.s32.totalorder %s25_s15, 2  ;;  %p169_p2 = scmp.lt.s32.totalorder %s948_s14, 3 }
   0x5   : > { %s1127_s15 = smov (%p27_p1, %s25_s15), 0  ;;  %p170_p3 = pnand %p758_p0, %p169_p2 }
   0x6   : > { %v902_v0 = vld [vmem:[%s1121_s1] sm:$0xff] (!%p170_p3)   ;;  %s759_s18 = sshll.u32 (!%p170_p3), %s940_s12, 5  ;;  %v903_v1 = vld [vmem:[%s1121_s1 + $0x8] sm:$0xff] (!%p170_p3)   ;;  %v904_v2 = vld [vmem:[%s1121_s1 + $0x10] sm:$0xff] (!%p170_p3)  }
   0x7   : > { %173 = sbr.rel (%p170_p3) target bundleno = 283 (0x11b), region = 32  ;;  %p204_p4 = scmp.lt.s32.totalorder (!%p170_p3), %s759_s18, 63  ;;  %814 = vmatprep.subr.bf16.mxu0 (!%p170_p3), %v902_v0  ;;  %862 = vmatprep.subr.bf16.mxu1 (!%p170_p3), %v902_v0  ;;  %v905_v3 = vld [vmem:[%s1121_s1 + $0x18] sm:$0xff] (!%p170_p3)   ;;  %v906_v6 = vld [vmem:[%s1121_s1 + $0x20] sm:$0xff] (!%p170_p3)   ;;  %v907_v7 = vld [vmem:[%s1121_s1 + $0x28] sm:$0xff] (!%p170_p3)  }
   0x8   : > { %815 = vmatpush3.bf16.msra.mxu0 (!%p170_p3), %v902_v0  ;;  %870 = vmatpush3.bf16.msra.mxu1 (!%p170_p3), %v902_v0  ;;  %v908_v8 = vld [vmem:[%s1121_s1 + $0x30] sm:$0xff] (!%p170_p3)   ;;  %v909_v9 = vld [vmem:[%s1121_s1 + $0x38] sm:$0xff] (!%p170_p3)   ;;  %v1039_v24 = vld [vmem:[%s1122_s2] ss:$0 sm:$0xff] (!%p170_p3) }
   0x9   : > { %816 = vmatprep.subr.bf16.mxu0 (!%p170_p3), %v903_v1  ;;  %863 = vmatprep.subr.bf16.mxu1 (!%p170_p3), %v903_v1 }
   0xc   : > { %817 = vmatpush3.bf16.msra.mxu0 (!%p170_p3), %v903_v1  ;;  %871 = vmatpush3.bf16.msra.mxu1 (!%p170_p3), %v903_v1 }
   0xd   : > { %818 = vmatprep.subr.bf16.mxu0 (!%p170_p3), %v904_v2  ;;  %864 = vmatprep.subr.bf16.mxu1 (!%p170_p3), %v904_v2 }
   0xe   : > { %s1129_s18 = smov (!%p204_p4, %s759_s18), 63 }
   0xf   : > { %s760_s23 = sshll.u32 %s1129_s18, 2  ;;  %s762_s12 = sshll.u32 %s1129_s18, 3 }
  0x10   : > { %s1003_s26 = scalar_lea.vmem %s1120_s0, %s760_s23  ;;  %819 = vmatpush3.bf16.msra.mxu0 %v904_v2  ;;  %872 = vmatpush3.bf16.msra.mxu1 %v904_v2  ;;  %s1047_s19 = scalar_lea.vmem %s1123_s3, %s762_s12 }
  0x11   : > { %v910_v4 = vld [vmem:[%s1003_s26] sm:$0xff]   ;;  %820 = vmatprep.subr.bf16.mxu0 %v905_v3  ;;  %865 = vmatprep.subr.bf16.mxu1 %v905_v3  ;;  %v912_v10 = vld [vmem:[%s1003_s26 + $0x8] sm:$0xff]   ;;  %v914_v12 = vld [vmem:[%s1003_s26 + $0x10] sm:$0xff]  }
  0x12   : > { %v911_v5 = vld [vmem:[%s1003_s26 + $0x40] sm:$0xff]   ;;  %830 = vmatprep.mubr.bf16.mxu0 %v910_v4  ;;  %v913_v11 = vld [vmem:[%s1003_s26 + $0x48] sm:$0xff]   ;;  %v915_v13 = vld [vmem:[%s1003_s26 + $0x50] sm:$0xff]  }
  0x13   : > { %846 = vmatprep.mubr.bf16.mxu1 %v911_v5  ;;  %v916_v14 = vld [vmem:[%s1003_s26 + $0x18] sm:$0xff]   ;;  %v918_v16 = vld [vmem:[%s1003_s26 + $0x20] sm:$0xff]   ;;  %v920_v18 = vld [vmem:[%s1003_s26 + $0x28] sm:$0xff]  }
  0x14   : > { %821 = vmatpush3.bf16.msra.mxu0 %v905_v3  ;;  %873 = vmatpush3.bf16.msra.mxu1 %v905_v3  ;;  %v917_v15 = vld [vmem:[%s1003_s26 + $0x58] sm:$0xff]   ;;  %v919_v17 = vld [vmem:[%s1003_s26 + $0x60] sm:$0xff]   ;;  %v921_v19 = vld [vmem:[%s1003_s26 + $0x68] sm:$0xff]  }
  0x15   : > { %822 = vmatprep.subr.bf16.mxu0 %v906_v6  ;;  %866 = vmatprep.subr.bf16.mxu1 %v906_v6  ;;  %v922_v20 = vld [vmem:[%s1003_s26 + $0x30] sm:$0xff]   ;;  %v924_v22 = vld [vmem:[%s1003_s26 + $0x38] sm:$0xff]  }
  0x16   : > { %v923_v21 = vld [vmem:[%s1003_s26 + $0x70] sm:$0xff]   ;;  %v925_v23 = vld [vmem:[%s1003_s26 + $0x78] sm:$0xff]  }
  0x18   : > { %823 = vmatpush3.bf16.msra.mxu0 %v906_v6  ;;  %874 = vmatpush3.bf16.msra.mxu1 %v906_v6 }
  0x19   : > { %824 = vmatprep.subr.bf16.mxu0 %v907_v7  ;;  %867 = vmatprep.subr.bf16.mxu1 %v907_v7 }
  0x1c   : > { %825 = vmatpush3.bf16.msra.mxu0 %v907_v7  ;;  %875 = vmatpush3.bf16.msra.mxu1 %v907_v7 }
  0x1d   : > { %826 = vmatprep.subr.bf16.mxu0 %v908_v8  ;;  %868 = vmatprep.subr.bf16.mxu1 %v908_v8 }
  0x20   : > { %827 = vmatpush3.bf16.msra.mxu0 %v908_v8  ;;  %876 = vmatpush3.bf16.msra.mxu1 %v908_v8 }
  0x21   : > { %828 = vmatprep.subr.bf16.mxu0 %v909_v9  ;;  %869 = vmatprep.subr.bf16.mxu1 %v909_v9 }
  0x24   : > { %829 = vmatpush3.bf16.msra.mxu0 %v909_v9  ;;  %877 = vmatpush3.bf16.msra.mxu1 %v909_v9 }
  0x27   : > { %831 = vmatmul.mubr.bf16.vlgmr.msra.gmra.mrb[0].mxu0 %v912_v10  ;;  %847 = vmatmul.mubr.bf16.vlgmr.msra.gmra.mrb[0].mxu1 %v913_v11 }
  0x28   : > { %834 = vmatprep.mubr.bf16.mxu0 %v914_v12  ;;  %850 = vmatprep.mubr.bf16.mxu1 %v915_v13 }
  0x2f   : > { %835 = vmatmul.mubr.bf16.gmra.mrb[4].mxu0 %v916_v14  ;;  %851 = vmatmul.mubr.bf16.gmra.mrb[4].mxu1 %v917_v15 }
  0x30   : > { %838 = vmatprep.mubr.bf16.mxu0 %v918_v16  ;;  %854 = vmatprep.mubr.bf16.mxu1 %v919_v17 }
  0x37   : > { %839 = vmatmul.mubr.bf16.gmra.mrb[8].mxu0 %v920_v18  ;;  %855 = vmatmul.mubr.bf16.gmra.mrb[8].mxu1 %v921_v19 }
  0x38   : > { %842 = vmatprep.mubr.bf16.mxu0 %v922_v20  ;;  %858 = vmatprep.mubr.bf16.mxu1 %v923_v21 }
  0x3f   : > { %843 = vmatmul.mubr.bf16.gmra.mrb[12].mxu0 %v924_v22  ;;  %859 = vmatmul.mubr.bf16.gmra.mrb[12].mxu1 %v925_v23 }
  0xfa   : > { %v832_v25 = vpop.f32.mrb[0].mxu0  ;;  %v848_v26 = vpop.f32.mrb[0].mxu1 }
  0xfb   : > { %v468_v27 = vadd.f32 %v832_v25, %v1039_v24  ;;  %v532_v28 = vadd.f32 %v848_v26, %v1039_v24  ;;  %v459_v29 = vpop.f32.mrb[1].mxu0  ;;  %v523_v30 = vpop.f32.mrb[1].mxu1 }
  0xfc   : > { %v460_v31 = vadd.f32 %v1039_v24, %v459_v29  ;;  %v524_v32 = vadd.f32 %v1039_v24, %v523_v30  ;;  %v833_v33 = vpop.f32.mrb[2].mxu0  ;;  %v849_v34 = vpop.f32.mrb[2].mxu1 }
  0xfd   : > { %v588_v35 = vmax.f32 %v468_v27, 0.0  ;;  %v604_v36 = vmax.f32 %v532_v28, 0.0  ;;  %v471_v37 = vadd.f32 %v833_v33, %v1039_v24  ;;  %v535_v38 = vadd.f32 %v849_v34, %v1039_v24  ;;  %v462_v39 = vpop.f32.mrb[3].mxu0  ;;  %v526_v40 = vpop.f32.mrb[3].mxu1 }
  0xfe   : > { %v586_v41 = vmax.f32 %v460_v31, 0.0  ;;  %v602_v42 = vmax.f32 %v524_v32, 0.0  ;;  %v463_v43 = vadd.f32 %v1039_v24, %v462_v39  ;;  %v527_v44 = vadd.f32 %v1039_v24, %v526_v40 }
  0xff   : > { %620 = vst [vmem:[%s1047_s19 + $0x10] sm:$0xff] %v588_v35  ;;  %636 = vst [vmem:[%s1047_s19 + $0x90] sm:$0xff] %v604_v36  ;;  %v589_v45 = vmax.f32 %v471_v37, 0.0  ;;  %v605_v46 = vmax.f32 %v535_v38, 0.0 }
 0x100   : > { %618 = vst [vmem:[%s1047_s19] sm:$0xff] %v586_v41  ;;  %634 = vst [vmem:[%s1047_s19 + $0x80] sm:$0xff] %v602_v42  ;;  %v587_v47 = vmax.f32 %v463_v43, 0.0  ;;  %v603_v48 = vmax.f32 %v527_v44, 0.0 }
 0x101   : > { %621 = vst [vmem:[%s1047_s19 + $0x18] sm:$0xff] %v589_v45  ;;  %637 = vst [vmem:[%s1047_s19 + $0x98] sm:$0xff] %v605_v46 }
 0x102   : > { %619 = vst [vmem:[%s1047_s19 + $0x8] sm:$0xff] %v587_v47  ;;  %635 = vst [vmem:[%s1047_s19 + $0x88] sm:$0xff] %v603_v48  ;;  %v836_v49 = vpop.f32.mrb[4].mxu0  ;;  %v852_v50 = vpop.f32.mrb[4].mxu1 }
 0x103   : > { %v484_v51 = vadd.f32 %v836_v49, %v1039_v24  ;;  %v548_v52 = vadd.f32 %v852_v50, %v1039_v24  ;;  %v475_v53 = vpop.f32.mrb[5].mxu0  ;;  %v539_v54 = vpop.f32.mrb[5].mxu1 }
 0x104   : > { %v476_v55 = vadd.f32 %v1039_v24, %v475_v53  ;;  %v540_v56 = vadd.f32 %v1039_v24, %v539_v54  ;;  %v837_v57 = vpop.f32.mrb[6].mxu0  ;;  %v853_v58 = vpop.f32.mrb[6].mxu1 }
 0x105   : > { %v592_v59 = vmax.f32 %v484_v51, 0.0  ;;  %v608_v60 = vmax.f32 %v548_v52, 0.0  ;;  %v487_v61 = vadd.f32 %v837_v57, %v1039_v24  ;;  %v551_v62 = vadd.f32 %v853_v58, %v1039_v24  ;;  %v478_v63 = vpop.f32.mrb[7].mxu0  ;;  %v542_v0 = vpop.f32.mrb[7].mxu1 }
 0x106   : > { %v590_v1 = vmax.f32 %v476_v55, 0.0  ;;  %v606_v2 = vmax.f32 %v540_v56, 0.0  ;;  %v479_v3 = vadd.f32 %v1039_v24, %v478_v63  ;;  %v543_v4 = vadd.f32 %v1039_v24, %v542_v0 }
 0x107   : > { %624 = vst [vmem:[%s1047_s19 + $0x30] sm:$0xff] %v592_v59  ;;  %640 = vst [vmem:[%s1047_s19 + $0xb0] sm:$0xff] %v608_v60  ;;  %v593_v5 = vmax.f32 %v487_v61, 0.0  ;;  %v609_v6 = vmax.f32 %v551_v62, 0.0 }
 0x108   : > { %622 = vst [vmem:[%s1047_s19 + $0x20] sm:$0xff] %v590_v1  ;;  %638 = vst [vmem:[%s1047_s19 + $0xa0] sm:$0xff] %v606_v2  ;;  %v591_v7 = vmax.f32 %v479_v3, 0.0  ;;  %v607_v8 = vmax.f32 %v543_v4, 0.0 }
 0x109   : > { %625 = vst [vmem:[%s1047_s19 + $0x38] sm:$0xff] %v593_v5  ;;  %641 = vst [vmem:[%s1047_s19 + $0xb8] sm:$0xff] %v609_v6 }
 0x10a   : > { %623 = vst [vmem:[%s1047_s19 + $0x28] sm:$0xff] %v591_v7  ;;  %639 = vst [vmem:[%s1047_s19 + $0xa8] sm:$0xff] %v607_v8  ;;  %v840_v9 = vpop.f32.mrb[8].mxu0  ;;  %v856_v10 = vpop.f32.mrb[8].mxu1 }
 0x10b   : > { %v500_v11 = vadd.f32 %v840_v9, %v1039_v24  ;;  %v564_v12 = vadd.f32 %v856_v10, %v1039_v24  ;;  %v491_v13 = vpop.f32.mrb[9].mxu0  ;;  %v555_v14 = vpop.f32.mrb[9].mxu1 }
 0x10c   : > { %v492_v15 = vadd.f32 %v1039_v24, %v491_v13  ;;  %v556_v16 = vadd.f32 %v1039_v24, %v555_v14  ;;  %v841_v17 = vpop.f32.mrb[10].mxu0  ;;  %v857_v18 = vpop.f32.mrb[10].mxu1 }
 0x10d   : > { %v596_v19 = vmax.f32 %v500_v11, 0.0  ;;  %v612_v20 = vmax.f32 %v564_v12, 0.0  ;;  %v503_v21 = vadd.f32 %v841_v17, %v1039_v24  ;;  %v567_v22 = vadd.f32 %v857_v18, %v1039_v24  ;;  %v494_v23 = vpop.f32.mrb[11].mxu0  ;;  %v558_v25 = vpop.f32.mrb[11].mxu1 }
 0x10e   : > { %v594_v26 = vmax.f32 %v492_v15, 0.0  ;;  %v610_v27 = vmax.f32 %v556_v16, 0.0  ;;  %v495_v28 = vadd.f32 %v1039_v24, %v494_v23  ;;  %v559_v29 = vadd.f32 %v1039_v24, %v558_v25 }
 0x10f   : > { %628 = vst [vmem:[%s1047_s19 + $0x50] sm:$0xff] %v596_v19  ;;  %644 = vst [vmem:[%s1047_s19 + $0xd0] sm:$0xff] %v612_v20  ;;  %v597_v30 = vmax.f32 %v503_v21, 0.0  ;;  %v613_v31 = vmax.f32 %v567_v22, 0.0 }
 0x110   : > { %626 = vst [vmem:[%s1047_s19 + $0x40] sm:$0xff] %v594_v26  ;;  %642 = vst [vmem:[%s1047_s19 + $0xc0] sm:$0xff] %v610_v27  ;;  %v595_v32 = vmax.f32 %v495_v28, 0.0  ;;  %v611_v33 = vmax.f32 %v559_v29, 0.0 }
 0x111   : > { %629 = vst [vmem:[%s1047_s19 + $0x58] sm:$0xff] %v597_v30  ;;  %645 = vst [vmem:[%s1047_s19 + $0xd8] sm:$0xff] %v613_v31 }
 0x112   : > { %627 = vst [vmem:[%s1047_s19 + $0x48] sm:$0xff] %v595_v32  ;;  %643 = vst [vmem:[%s1047_s19 + $0xc8] sm:$0xff] %v611_v33  ;;  %v844_v34 = vpop.f32.mrb[12].mxu0  ;;  %v860_v35 = vpop.f32.mrb[12].mxu1 }
 0x113   : > { %v516_v36 = vadd.f32 %v844_v34, %v1039_v24  ;;  %v580_v37 = vadd.f32 %v860_v35, %v1039_v24  ;;  %v507_v38 = vpop.f32.mrb[13].mxu0  ;;  %v571_v39 = vpop.f32.mrb[13].mxu1 }
 0x114   : > { %v508_v40 = vadd.f32 %v1039_v24, %v507_v38  ;;  %v572_v41 = vadd.f32 %v1039_v24, %v571_v39  ;;  %v845_v42 = vpop.f32.mrb[14].mxu0  ;;  %v861_v43 = vpop.f32.mrb[14].mxu1 }
 0x115   : > { %v600_v44 = vmax.f32 %v516_v36, 0.0  ;;  %v616_v45 = vmax.f32 %v580_v37, 0.0  ;;  %v519_v46 = vadd.f32 %v845_v42, %v1039_v24  ;;  %v583_v47 = vadd.f32 %v861_v43, %v1039_v24  ;;  %v510_v48 = vpop.f32.mrb[15].mxu0  ;;  %v574_v49 = vpop.f32.mrb[15].mxu1 }
 0x116   : > { %v598_v50 = vmax.f32 %v508_v40, 0.0  ;;  %v614_v51 = vmax.f32 %v572_v41, 0.0  ;;  %v511_v52 = vadd.f32 %v1039_v24, %v510_v48  ;;  %v575_v53 = vadd.f32 %v1039_v24, %v574_v49 }
 0x117   : > { %632 = vst [vmem:[%s1047_s19 + $0x70] sm:$0xff] %v600_v44  ;;  %648 = vst [vmem:[%s1047_s19 + $0xf0] sm:$0xff] %v616_v45  ;;  %v601_v54 = vmax.f32 %v519_v46, 0.0  ;;  %v617_v55 = vmax.f32 %v583_v47, 0.0 }
 0x118   : > { %630 = vst [vmem:[%s1047_s19 + $0x60] sm:$0xff] %v598_v50  ;;  %646 = vst [vmem:[%s1047_s19 + $0xe0] sm:$0xff] %v614_v51  ;;  %v599_v56 = vmax.f32 %v511_v52, 0.0  ;;  %v615_v57 = vmax.f32 %v575_v53, 0.0 }
 0x119   : > { %633 = vst [vmem:[%s1047_s19 + $0x78] sm:$0xff] %v601_v54  ;;  %649 = vst [vmem:[%s1047_s19 + $0xf8] sm:$0xff] %v617_v55 }
 0x11a   : > { %631 = vst [vmem:[%s1047_s19 + $0x68] sm:$0xff] %v599_v56  ;;  %647 = vst [vmem:[%s1047_s19 + $0xe8] sm:$0xff] %v615_v57 }
 0x11b PF: > { %s13_s14 = sadd.s32 1, %s948_s14   ;;  %s1124_s12 = smov %s944_s13 }
 0x11c   : > { %p10_p5 = scmp.ge.s32.totalorder %s13_s14, 4   ;;  %s1125_s13 = smov %s1127_s15 }
 0x11e   :  { %12 = sbr.rel (!%p10_p5) target bundleno = 2 (0x2), region = 68 }

</bundles_post_ra>
